<compile_context>
chip_gen: v5e
topology: v5e:2x2
jax: 0.10.0
libtpu: 0.0.40
codegen_flags: <defaults>
</compile_context>

<pallas_src>
import math

import jax
import jax.numpy as jnp
from jax.experimental import pallas as pl
from jax.experimental.pallas import tpu as pltpu

_EPS = 1e-5                           # dice smoothing (numerator & denominator)
_MAX_TN = 8192                        # max spatial (lane) tile width
_MAX_BLOCK_BYTES = 2 * 1024 * 1024    # per-input block budget (f32 worst case)
                                      # 2 inputs x 2 pipeline buffers x 2 MiB = 8 MiB
                                      # -> fits default scoped VMEM on v5e/v6e/v7x


def _round_up(v, m):
    return -(-v // m) * m


def _make_dice_sums_kernel(n_cols, tn, k_per_chunk, needs_mask):
    """Build the kernel accumulating per-row [inter, sum(p), sum(t)]."""

    def kernel(x_ref, t_ref, o_ref, inter_ref, psum_ref, tsum_ref):
        c = pl.program_id(0)          # spatial super-chunk ("parallel")
        k = pl.program_id(1)          # spatial tile within chunk ("arbitrary")

        @pl.when(k == 0)
        def _init():
            inter_ref[...] = jnp.zeros_like(inter_ref)
            psum_ref[...] = jnp.zeros_like(psum_ref)
            tsum_ref[...] = jnp.zeros_like(tsum_ref)

        # Cast to f32 inside the kernel only (HBM traffic stays at input dtype).
        x = x_ref[...].astype(jnp.float32)
        t = t_ref[...].astype(jnp.float32)
        p = jax.nn.sigmoid(x)

        if needs_mask:
            # Mask the ragged tail of the last (partially out-of-bounds) tile.
            tile_idx = c * k_per_chunk + k
            col = tile_idx * tn + jax.lax.broadcasted_iota(jnp.int32, x.shape, 1)
            valid = col < n_cols
            p = jnp.where(valid, p, 0.0)
            t = jnp.where(valid, t, 0.0)

        inter_ref[...] += jnp.sum(p * t, axis=-1, keepdims=True)
        psum_ref[...] += jnp.sum(p, axis=-1, keepdims=True)
        tsum_ref[...] += jnp.sum(t, axis=-1, keepdims=True)

        @pl.when(k == k_per_chunk - 1)
        def _finalize():
            rows = x_ref.shape[0]
            lane = jax.lax.broadcasted_iota(jnp.int32, (rows, 128), 1)
            tile = jnp.where(lane == 0, inter_ref[...],
                   jnp.where(lane == 1, psum_ref[...],
                   jnp.where(lane == 2, tsum_ref[...], jnp.float32(0.0))))
            o_ref[0] = tile            # lane-dense (rows, 128) store, once/chunk

    return kernel


def soft_dice_loss(logits, target):
    """DiceLoss(sigmoid=True), mean over batch and channels (the `criterion`)."""
    B, C = logits.shape[0], logits.shape[1]
    R = B * C
    N = int(math.prod(logits.shape[2:]))

    # Keep native dtypes across the HBM boundary; no padding, no host astype.
    x = logits.reshape(R, N)
    t = target.reshape(R, N)
    if t.dtype == jnp.bool_:
        t = t.astype(jnp.int8)

    # Spatial (lane) tile: as large as possible within the per-block budget,
    # capped at 8192 lanes.  Rows use the full B*C extent (exempt from the
    # (8,128) rule because it equals the full array dim), so no row padding.
    tn_cap = max(128, (_MAX_BLOCK_BYTES // (max(R, 1) * 4)) // 128 * 128)
    tn = min(_round_up(N, 128), min(tn_cap, _MAX_TN))
    k_total = -(-N // tn)

    # Leading "parallel" chunk axis so v7x's second TensorCore gets work.
    num_chunks = 2 if (k_total >= 2 and k_total % 2 == 0) else 1
    k_per_chunk = k_total // num_chunks
    needs_mask = (k_total * tn != N)

    kernel = _make_dice_sums_kernel(N, tn, k_per_chunk, needs_mask)

    sums = pl.pallas_call(
        kernel,
        out_shape=jax.ShapeDtypeStruct((num_chunks, R, 128), jnp.float32),
        grid_spec=pltpu.PrefetchScalarGridSpec(
            num_scalar_prefetch=0,
            grid=(num_chunks, k_per_chunk),
            in_specs=[
                pl.BlockSpec((R, tn), lambda c, k: (0, c * k_per_chunk + k)),
                pl.BlockSpec((R, tn), lambda c, k: (0, c * k_per_chunk + k)),
            ],
            out_specs=pl.BlockSpec((1, R, 128), lambda c, k: (c, 0, 0)),
            scratch_shapes=[pltpu.VMEM((R, 1), jnp.float32)] * 3,
        ),
        compiler_params=pltpu.CompilerParams(
            dimension_semantics=("parallel", "arbitrary")),
    )(x, t)

    sums = jnp.sum(sums, axis=0)                 # fold spatial chunks -> (R, 128)
    inter, psum, tsum = sums[:, 0], sums[:, 1], sums[:, 2]
    dice = 1.0 - (2.0 * inter + _EPS) / (psum + tsum + _EPS)
    return jnp.mean(dice)


def _soft_dice_loss_ref(logits, target):
    """Pure-JAX reference (same math, no Pallas) for correctness checking."""
    B, C = logits.shape[0], logits.shape[1]
    x = logits.reshape(B * C, -1).astype(jnp.float32)
    t = target.reshape(B * C, -1).astype(jnp.float32)
    p = jax.nn.sigmoid(x)
    inter = jnp.sum(p * t, axis=-1)
    psum = jnp.sum(p, axis=-1)
    tsum = jnp.sum(t, axis=-1)
    dice = 1.0 - (2.0 * inter + _EPS) / (psum + tsum + _EPS)
    return jnp.mean(dice)


def _interpolate_nearest(label, size):
    """Matches F.interpolate(label, size) default mode='nearest':
    src_idx = floor(dst_idx * in_size / out_size)."""
    out = label.astype(jnp.float32)
    spatial_in = label.shape[2:]
    for axis, (s_in, s_out) in enumerate(zip(spatial_in, size)):
        idx = (jnp.arange(s_out) * s_in // s_out).astype(jnp.int32)
        out = jnp.take(out, idx, axis=2 + axis)
    return out


class CriterionWrapper:
    """JAX port of biomedmbz_glioma.loss.CriterionWrapper."""

    def __init__(self, criterion):
        self.criterion = criterion

    def __call__(self, logits, target):
        if isinstance(logits, jax.Array):
            return self.criterion(logits, target)
        elif isinstance(logits, list):
            if logits[0].shape[-1] < logits[1].shape[-1]:
                logits = logits[::-1]
            weights = [1 / 2 ** i for i in range(len(logits))]
            loss = weights[0] * self.criterion(logits[0], target)
            for weight, _logits in zip(weights[1:], logits[1:]):
                loss = loss + weight * self.criterion(
                    _logits, self.interpolate_label(target, scale=weight))
            return loss
        else:
            raise ValueError(f"type(logits) {type(logits)} is not recognized")

    def interpolate_label(self, label, scale):
        dtype = label.dtype
        size = [round(s * scale) for s in label.shape[2:]]
        out = _interpolate_nearest(label, size)
        return out.astype(dtype)


if __name__ == "__main__":
    key = jax.random.PRNGKey(0)
    keys = jax.random.split(key, 7)

    # Small shapes matching the module's typical use.
    B, C, H, W = 2, 4, 16, 16
    logits_full = jax.random.normal(keys[0], (B, C, H, W), jnp.float32)
    logits_half = jax.random.normal(keys[1], (B, C, H // 2, W // 2), jnp.float32)
    target = (jax.random.uniform(keys[2], (B, C, H, W)) > 0.5).astype(jnp.float32)

    wrapper = CriterionWrapper(soft_dice_loss)
    ref_wrapper = CriterionWrapper(_soft_dice_loss_ref)

    # Single-tensor path.
    loss_single = wrapper(logits_full, target)
    ref_single = ref_wrapper(logits_full, target)

    # Deep-supervision list path (small-first on purpose to exercise the
    # reversal branch; weights become [1, 0.5] with a 0.5x-downsampled label).
    loss_ds = wrapper([logits_half, logits_full], target)
    ref_ds = ref_wrapper([logits_half, logits_full], target)

    # Ragged multi-tile case: 2 spatial tiles -> parallel chunk axis + tail mask.
    logits_big = jax.random.normal(keys[3], (1, 2, 100, 100), jnp.float32)
    target_big = (jax.random.uniform(keys[4], (1, 2, 100, 100)) > 0.5).astype(jnp.float32)
    loss_big = wrapper(logits_big, target_big)
    ref_big = ref_wrapper(logits_big, target_big)

    # Odd number of spatial tiles -> multi-step in-kernel accumulation + mask.
    logits_odd = jax.random.normal(keys[5], (1, 1, 96, 192), jnp.float32)
    target_odd = (jax.random.uniform(keys[6], (1, 1, 96, 192)) > 0.5).astype(jnp.float32)
    loss_odd = wrapper(logits_odd, target_odd)
    ref_odd = ref_wrapper(logits_odd, target_odd)

    results = (loss_single, loss_ds, loss_big, loss_odd)
    expected = (ref_single, ref_ds, ref_big, ref_odd)
    jax.block_until_ready(results)

    for got, want in zip(results, expected):
        assert bool(jnp.allclose(got, want, rtol=1e-4, atol=1e-5)), (got, want)
    print("KERNEL_OK")
</pallas_src>

<mosaic_0001>
module attributes {stable_mosaic.version = 11 : i64} {
  func.func @kernel(%arg0: i32, %arg1: i32, %arg2: memref<8x256xf32, #tpu.memory_space<vmem>>, %arg3: memref<8x256xf32, #tpu.memory_space<vmem>>, %arg4: memref<1x8x128xf32, #tpu.memory_space<vmem>>, %arg5: memref<8x1xf32, #tpu.memory_space<vmem>>, %arg6: memref<8x1xf32, #tpu.memory_space<vmem>>, %arg7: memref<8x1xf32, #tpu.memory_space<vmem>>) attributes {dimension_semantics = [#tpu.dimension_semantics<parallel>, #tpu.dimension_semantics<arbitrary>], iteration_bounds = array<i64: 1, 1>, scalar_prefetch = 0 : i64, scratch_operands = 3 : i64, tpu.core_type = #tpu.core_type<tc>, window_params = [{transform_indices = @transform_0, window_bounds = array<i64: 8, 256>}, {transform_indices = @transform_1, window_bounds = array<i64: 8, 256>}, {transform_indices = @transform_2, window_bounds = array<i64: 1, 8, 128>}]} {
    %c0_i32 = arith.constant 0 : i32
    %0 = arith.cmpi eq, %arg1, %c0_i32 : i32
    %1 = arith.extui %0 : i1 to i32
    %c0_i32_0 = arith.constant 0 : i32
    %2 = arith.cmpi ne, %1, %c0_i32_0 : i32
    scf.if %2 {
      %cst_21 = arith.constant 0.000000e+00 : f32
      %29 = vector.broadcast %cst_21 : f32 to vector<8x1xf32>
      %c0_22 = arith.constant 0 : index
      %c0_23 = arith.constant 0 : index
      %30 = vector.load %arg5[%c0_22, %c0_23] : memref<8x1xf32, #tpu.memory_space<vmem>>, vector<8x1xf32>
      tpu.vector_store %arg5[%c0_22, %c0_23], %29 {strides = array<i32>} : memref<8x1xf32, #tpu.memory_space<vmem>>, vector<8x1xf32>,
      %cst_24 = arith.constant 0.000000e+00 : f32
      %31 = vector.broadcast %cst_24 : f32 to vector<8x1xf32>
      %c0_25 = arith.constant 0 : index
      %c0_26 = arith.constant 0 : index
      %32 = vector.load %arg6[%c0_25, %c0_26] : memref<8x1xf32, #tpu.memory_space<vmem>>, vector<8x1xf32>
      tpu.vector_store %arg6[%c0_25, %c0_26], %31 {strides = array<i32>} : memref<8x1xf32, #tpu.memory_space<vmem>>, vector<8x1xf32>,
      %cst_27 = arith.constant 0.000000e+00 : f32
      %33 = vector.broadcast %cst_27 : f32 to vector<8x1xf32>
      %c0_28 = arith.constant 0 : index
      %c0_29 = arith.constant 0 : index
      %34 = vector.load %arg7[%c0_28, %c0_29] : memref<8x1xf32, #tpu.memory_space<vmem>>, vector<8x1xf32>
      tpu.vector_store %arg7[%c0_28, %c0_29], %33 {strides = array<i32>} : memref<8x1xf32, #tpu.memory_space<vmem>>, vector<8x1xf32>,
    } else {
    }
    %c0 = arith.constant 0 : index
    %c0_1 = arith.constant 0 : index
    %3 = vector.load %arg2[%c0, %c0_1] : memref<8x256xf32, #tpu.memory_space<vmem>>, vector<8x256xf32>
    %c0_2 = arith.constant 0 : index
    %c0_3 = arith.constant 0 : index
    %4 = vector.load %arg3[%c0_2, %c0_3] : memref<8x256xf32, #tpu.memory_space<vmem>>, vector<8x256xf32>
    %5 = arith.negf %3 : vector<8x256xf32>
    %6 = math.exp %5 : vector<8x256xf32>
    %cst = arith.constant 1.000000e+00 : f32
    %7 = vector.broadcast %cst : f32 to vector<8x256xf32>
    %8 = arith.addf %7, %6 : vector<8x256xf32>
    %9 = arith.divf %7, %8 : vector<8x256xf32>
    %c0_4 = arith.constant 0 : index
    %c0_5 = arith.constant 0 : index
    %10 = vector.load %arg5[%c0_4, %c0_5] : memref<8x1xf32, #tpu.memory_space<vmem>>, vector<8x1xf32>
    %11 = arith.mulf %9, %4 : vector<8x256xf32>
    %cst_6 = arith.constant dense<0.000000e+00> : vector<8xf32>
    %12 = vector.multi_reduction <add>, %11, %cst_6 [1] : vector<8x256xf32> to vector<8xf32>
    %13 = vector.shape_cast %12 : vector<8xf32> to vector<8x1xf32>
    %14 = arith.addf %10, %13 : vector<8x1xf32>
    %c0_7 = arith.constant 0 : index
    %c0_8 = arith.constant 0 : index
    %15 = vector.load %arg5[%c0_7, %c0_8] : memref<8x1xf32, #tpu.memory_space<vmem>>, vector<8x1xf32>
    tpu.vector_store %arg5[%c0_7, %c0_8], %14 {strides = array<i32>} : memref<8x1xf32, #tpu.memory_space<vmem>>, vector<8x1xf32>,
    %c0_9 = arith.constant 0 : index
    %c0_10 = arith.constant 0 : index
    %16 = vector.load %arg6[%c0_9, %c0_10] : memref<8x1xf32, #tpu.memory_space<vmem>>, vector<8x1xf32>
    %cst_11 = arith.constant dense<0.000000e+00> : vector<8xf32>
    %17 = vector.multi_reduction <add>, %9, %cst_11 [1] : vector<8x256xf32> to vector<8xf32>
    %18 = vector.shape_cast %17 : vector<8xf32> to vector<8x1xf32>
    %19 = arith.addf %16, %18 : vector<8x1xf32>
    %c0_12 = arith.constant 0 : index
    %c0_13 = arith.constant 0 : index
    %20 = vector.load %arg6[%c0_12, %c0_13] : memref<8x1xf32, #tpu.memory_space<vmem>>, vector<8x1xf32>
    tpu.vector_store %arg6[%c0_12, %c0_13], %19 {strides = array<i32>} : memref<8x1xf32, #tpu.memory_space<vmem>>, vector<8x1xf32>,
    %c0_14 = arith.constant 0 : index
    %c0_15 = arith.constant 0 : index
    %21 = vector.load %arg7[%c0_14, %c0_15] : memref<8x1xf32, #tpu.memory_space<vmem>>, vector<8x1xf32>
    %cst_16 = arith.constant dense<0.000000e+00> : vector<8xf32>
    %22 = vector.multi_reduction <add>, %4, %cst_16 [1] : vector<8x256xf32> to vector<8xf32>
    %23 = vector.shape_cast %22 : vector<8xf32> to vector<8x1xf32>
    %24 = arith.addf %21, %23 : vector<8x1xf32>
    %c0_17 = arith.constant 0 : index
    %c0_18 = arith.constant 0 : index
    %25 = vector.load %arg7[%c0_17, %c0_18] : memref<8x1xf32, #tpu.memory_space<vmem>>, vector<8x1xf32>
    tpu.vector_store %arg7[%c0_17, %c0_18], %24 {strides = array<i32>} : memref<8x1xf32, #tpu.memory_space<vmem>>, vector<8x1xf32>,
    %c0_i32_19 = arith.constant 0 : i32
    %26 = arith.cmpi eq, %arg1, %c0_i32_19 : i32
    %27 = arith.extui %26 : i1 to i32
    %c0_i32_20 = arith.constant 0 : i32
    %28 = arith.cmpi ne, %27, %c0_i32_20 : i32
    scf.if %28 {
      %29 = tpu.iota {dimensions = array<i32: 1>} : vector<8x128xi32>
      %c0_i32_21 = arith.constant 0 : i32
      %30 = vector.broadcast %c0_i32_21 : i32 to vector<8x128xi32>
      %31 = arith.cmpi eq, %29, %30 : vector<8x128xi32>
      %c0_22 = arith.constant 0 : index
      %c0_23 = arith.constant 0 : index
      %32 = vector.load %arg5[%c0_22, %c0_23] : memref<8x1xf32, #tpu.memory_space<vmem>>, vector<8x1xf32>
      %c1_i32 = arith.constant 1 : i32
      %33 = vector.broadcast %c1_i32 : i32 to vector<8x128xi32>
      %34 = arith.cmpi eq, %29, %33 : vector<8x128xi32>
      %c0_24 = arith.constant 0 : index
      %c0_25 = arith.constant 0 : index
      %35 = vector.load %arg6[%c0_24, %c0_25] : memref<8x1xf32, #tpu.memory_space<vmem>>, vector<8x1xf32>
      %c2_i32 = arith.constant 2 : i32
      %36 = vector.broadcast %c2_i32 : i32 to vector<8x128xi32>
      %37 = arith.cmpi eq, %29, %36 : vector<8x128xi32>
      %c0_26 = arith.constant 0 : index
      %c0_27 = arith.constant 0 : index
      %38 = vector.load %arg7[%c0_26, %c0_27] : memref<8x1xf32, #tpu.memory_space<vmem>>, vector<8x1xf32>
      %cst_28 = arith.constant 0.000000e+00 : f32
      %39 = vector.shape_cast %38 : vector<8x1xf32> to vector<8x1xf32>
      %40 = vector.broadcast %39 : vector<8x1xf32> to vector<8x128xf32>
      %41 = vector.broadcast %cst_28 : f32 to vector<8x128xf32>
      %42 = arith.select %37, %40, %41 : vector<8x128xi1>, vector<8x128xf32>
      %43 = vector.shape_cast %35 : vector<8x1xf32> to vector<8x1xf32>
      %44 = vector.broadcast %43 : vector<8x1xf32> to vector<8x128xf32>
      %45 = arith.select %34, %44, %42 : vector<8x128xi1>, vector<8x128xf32>
      %46 = vector.shape_cast %32 : vector<8x1xf32> to vector<8x1xf32>
      %47 = vector.broadcast %46 : vector<8x1xf32> to vector<8x128xf32>
      %48 = arith.select %31, %47, %45 : vector<8x128xi1>, vector<8x128xf32>
      %c0_29 = arith.constant 0 : index
      %c0_30 = arith.constant 0 : index
      %c0_31 = arith.constant 0 : index
      %49 = vector.load %arg4[%c0_29, %c0_30, %c0_31] : memref<1x8x128xf32, #tpu.memory_space<vmem>>, vector<1x8x128xf32>
      %50 = vector.shape_cast %49 : vector<1x8x128xf32> to vector<8x128xf32>
      %51 = vector.shape_cast %48 : vector<8x128xf32> to vector<1x8x128xf32>
      tpu.vector_store %arg4[%c0_29, %c0_30, %c0_31], %51 {strides = array<i32>} : memref<1x8x128xf32, #tpu.memory_space<vmem>>, vector<1x8x128xf32>,
    } else {
    }
    return
  }
  func.func @transform_0(%arg0: i32, %arg1: i32) -> (i32, i32) {
    %c1_i32 = arith.constant 1 : i32
    %0 = arith.muli %arg0, %c1_i32 : i32
    %1 = arith.addi %0, %arg1 : i32
    %c0_i32 = arith.constant 0 : i32
    %c0_i32_0 = arith.constant 0 : i32
    return %c0_i32, %1 : i32, i32
  }
  func.func @transform_1(%arg0: i32, %arg1: i32) -> (i32, i32) {
    %c1_i32 = arith.constant 1 : i32
    %0 = arith.muli %arg0, %c1_i32 : i32
    %1 = arith.addi %0, %arg1 : i32
    %c0_i32 = arith.constant 0 : i32
    %c0_i32_0 = arith.constant 0 : i32
    return %c0_i32, %1 : i32, i32
  }
  func.func @transform_2(%arg0: i32, %arg1: i32) -> (i32, i32, i32) {
    %c0_i32 = arith.constant 0 : i32
    %c0_i32_0 = arith.constant 0 : i32
    %c0_i32_1 = arith.constant 0 : i32
    return %arg0, %c0_i32, %c0_i32_0 : i32, i32, i32
  }
}

</mosaic_0001>

<bundles_post_ra>
// kernel: tpu_custom_call.1
= control target key start
LH: loop header
LB: loop body
LE: loop exit
PB: predicated region body
PF: predicated region fallthrough
CT: control target
= control target key end

     0   :  { %7 = vsyncpa [#allocation6], 0  ;;  %s302_s0 = inlined_call_operand.hbm [shape: f32[8,256], index: 0, kind: input, shape index: {}]   ;;  %s303_s1 = inlined_call_operand.hbm [shape: f32[8,256], index: 1, kind: input, shape index: {}]   ;;  %s304_s2 = inlined_call_operand.hbm [shape: f32[1,8,128], index: 2, kind: output, shape index: {}]  }
   0x1   :  { %8 = vsyncpa [#allocation9], 0 }
   0x2   :  { %9 = vsyncpa [#allocation7], 0  ;;  %s19_s11 = sshll.u32 %s302_s0, 4  ;;  %s267_s12 = smov [#allocation5]   ;;  %s20_s11 = int_to_ptr.hbm [resolvable:$true] %s19_s11 }
   0x3   :  { %s21_s13 = sshll.u32 %s267_s12, 4  ;;  %s34_s16 = sshll.u32 %s303_s1, 4  ;;  %s22_s13 = int_to_ptr.vmem [resolvable:$true] %s21_s13  ;;  %s35_s16 = int_to_ptr.hbm [resolvable:$true] %s34_s16 }
   0x4   :  { %24 = dma.hbm_to_vmem [thread:$0]  %s20_s11, 256, %s22_s13, [#allocation6]  }
   0x5   :  { %s268_s17 = smov [#allocation8]  }
   0x6   :  { %s36_s18 = sshll.u32 %s268_s17, 4  ;;  %s37_s18 = int_to_ptr.vmem [resolvable:$true] %s36_s18 }
   0x7   :  { %39 = dma.hbm_to_vmem [thread:$0]  %s35_s16, 256, %s37_s18, [#allocation9]  }
   0x8   :  { %261 = dma.done.wait [#allocation6], 256  }
   0x9   :  { %262 = vsyncadd [#allocation6], 4294967040 }
   0xa   :  { %263 = dma.done.wait [#allocation9], 256  }
   0xb   :  { %264 = vsyncadd [#allocation9], 4294967040  ;;  %v62_v0 = vld [vmem:[#allocation8] sm:$0xff]  ;;  %v63_v1 = vld [vmem:[#allocation8 + $0x8] sm:$0xff]  ;;  %vm56_vm0 = vcmask 7168   ;;  %v269_v7 = vmov 0.0   ;;  %v126_v49 = vlaneseq }
   0xc   :  { %v60_v2 = vld [vmem:[#allocation5] sm:$0xff]  ;;  %v118_v3 = vadd.f32 %v63_v1, %v62_v0  ;;  %v61_v4 = vld [vmem:[#allocation5 + $0x8] sm:$0xff]  ;;  %59 = vst.msk [vmem:[#allocation4] sm:$0xff] %vm56_vm0, %v269_v7  ;;  %v270_v36 = vmov 0   ;;  %s271_s0 = smov [#allocation10]   ;;  %s160_s21 = sshll.u32 %s304_s2, 4  ;;  %s161_s21 = int_to_ptr.hbm [resolvable:$true] %s160_s21 }
   0xd   :  { %v171_v5 = vmul.f32 -1.442695, %v60_v2  ;;  %v172_v6 = vmul.f32 -1.442695, %v61_v4  ;;  %57 = vst.msk [vmem:[#allocation2] sm:$0xff] %vm56_vm0, %v269_v7  ;;  %178 = vset.pattern.permute.xlu1 %v270_v36  ;;  %179 = vset.pattern.permute.xlu2 %v270_v36  ;;  %v127_v50 = vand.u32 127, %v126_v49 }
   0xe   :  { %119 = vadd.xlane.f32.xlu0 %v118_v3  ;;  %58 = vst.msk [vmem:[#allocation3] sm:$0xff] %vm56_vm0, %v269_v7  ;;  %s158_s1 = sshll.u32 %s271_s0, 4  ;;  %s159_s1 = int_to_ptr.vmem [resolvable:$true] %s158_s1 }
   0xf   :  { %181 = vpow2.f32 %v171_v5  ;;  %180 = vset.pattern.permute.xlu0 %v270_v36  ;;  %vm132_vm9 = vcmp.eq.s32.totalorder %v127_v50, 2  ;;  %vm130_vm10 = vcmp.eq.s32.totalorder %v127_v50, 1  ;;  %vm128_vm11 = vcmp.eq.s32.totalorder %v127_v50, 0 }
  0x10   :  { %183 = vpow2.f32 %v172_v6 }
  0x13   :  { %v117_v37 = vld [vmem:[#allocation4] sm:$0xff] }
  0x14   :  { %v102_v43 = vld [vmem:[#allocation2] sm:$0xff] }
  0x15   :  { %v182_v8 = vpop.eup %181  ;;  %v111_v41 = vld [vmem:[#allocation3] sm:$0xff] }
  0x16   :  { %v184_v9 = vpop.eup %183  ;;  %v70_v10 = vadd.f32 1.0, %v182_v8 }
  0x17   :  { %v71_v11 = vadd.f32 1.0, %v184_v9 }
  0x18   :  { %185 = vrcp.f32 %v70_v10  ;;  %vm77_vm1 = vweird.f32 %v70_v10  ;;  %v83_v15 = vand.u32 2147483648, %v70_v10  ;;  %v81_v18 = vand.u32 2147483647, %v70_v10 }
  0x19   :  { %187 = vrcp.f32 %v71_v11  ;;  %v98_v19 = vand.u32 2147483648, %v71_v11  ;;  %vm92_vm3 = vweird.f32 %v71_v11  ;;  %v96_v21 = vand.u32 2147483647, %v71_v11 }
  0x1a   :  { %v84_v23 = vor.u32 1.1754944e-38, %v83_v15  ;;  %vm82_vm6 = vcmp.eq.f32.partialorder %v81_v18, 8.507059e+37 }
  0x1b   :  { %v99_v26 = vor.u32 1.1754944e-38, %v98_v19  ;;  %vm97_vm8 = vcmp.eq.f32.partialorder %v96_v21, 8.507059e+37 }
  0x1e   :  { %v186_v12 = vpop.eup %185 }
  0x1f   :  { %v188_v13 = vpop.eup %187  ;;  %v73_v14 = vmul.f32 %v186_v12, %v70_v10  ;;  %vm78_vm2 = vweird.f32 %v186_v12 }
  0x20   :  { %v88_v16 = vmul.f32 %v188_v13, %v71_v11  ;;  %vm93_vm4 = vweird.f32 %v188_v13  ;;  %vm79_vm5 = vmor %vm77_vm1, %vm78_vm2 }
  0x21   :  { %v74_v17 = vsub.f32 1.0, %v73_v14  ;;  %vm94_vm7 = vmor %vm92_vm3, %vm93_vm4 }
  0x22   :  { %v89_v20 = vsub.f32 1.0, %v88_v16 }
  0x23   :  { %v75_v22 = vmul.f32 %v186_v12, %v74_v17 }
  0x24   :  { %v90_v24 = vmul.f32 %v188_v13, %v89_v20 }
  0x25   :  { %v76_v25 = vadd.f32 %v186_v12, %v75_v22 }
  0x26   :  { %v91_v27 = vadd.f32 %v188_v13, %v90_v24 }
  0x27   :  { %v80_v28 = vsel %vm79_vm5, %v186_v12, %v76_v25 }
  0x28   :  { %v85_v29 = vsel %vm82_vm6, %v84_v23, %v80_v28  ;;  %v95_v30 = vsel %vm94_vm7, %v188_v13, %v91_v27 }
  0x29   :  { %v100_v31 = vsel %vm97_vm8, %v99_v26, %v95_v30  ;;  %v103_v32 = vmul.f32 %v85_v29, %v62_v0 }
  0x2a   :  { %v112_v33 = vadd.f32 %v100_v31, %v85_v29  ;;  %v104_v34 = vmul.f32 %v100_v31, %v63_v1 }
  0x2c   :  { %113 = vadd.xlane.f32.xlu0 %v112_v33  ;;  %v105_v35 = vadd.f32 %v104_v34, %v103_v32 }
  0x2e   :  { %106 = vadd.xlane.f32.xlu1 %v105_v35 }
  0x81   :  { %v120_v38 = vpop.xlane.xlu0 %119 }
  0x82   :  { %v121_v39 = vadd.f32 %v120_v38, %v117_v37 }
  0x84   :  { %122 = vst.msk [vmem:[#allocation4] sm:$0xff] %vm56_vm0, %v121_v39 }
  0x8b   :  { %v133_v40 = vld [vmem:[#allocation4] sm:$0xff] }
  0x8c   :  { %136 = vperm.xlu1 %178, %v133_v40  }
  0x9f   :  { %v114_v42 = vpop.xlane.xlu0 %113 }
  0xa0   :  { %v115_v44 = vadd.f32 %v114_v42, %v111_v41 }
  0xa1   :  { %v107_v45 = vpop.xlane.xlu1 %106 }
  0xa2   :  { %116 = vst.msk [vmem:[#allocation3] sm:$0xff] %vm56_vm0, %v115_v44  ;;  %v108_v46 = vadd.f32 %v107_v45, %v102_v43 }
  0xa4   :  { %110 = vst.msk [vmem:[#allocation2] sm:$0xff] %vm56_vm0, %v108_v46 }
  0xa9   :  { %v131_v47 = vld [vmem:[#allocation3] sm:$0xff] }
  0xaa   :  { %142 = vperm.xlu2 %179, %v131_v47  }
  0xab   :  { %v129_v48 = vld [vmem:[#allocation2] sm:$0xff] }
  0xb2   :  { %148 = vperm.xlu2 %179, %v129_v48  }
  0xfe   :  { %v137_v52 = vpop.permute.xlu1 %136 }
  0xff   :  { %v139_v53 = vsel %vm132_vm9, %v137_v52, 0.0 }
 0x104   :  { %v143_v51 = vpop.permute.xlu2 %142 }
 0x105   :  { %v145_v54 = vsel %vm130_vm10, %v143_v51, %v139_v53 }
 0x10c   :  { %v149_v55 = vpop.permute.xlu2 %148 }
 0x10d   :  { %v151_v56 = vsel %vm128_vm11, %v149_v55, %v145_v54 }
 0x10e   :  { %152 = vst [vmem:[#allocation10] sm:$0xff] %v151_v56 }
 0x10f   :  { %163 = dma.vmem_to_hbm [thread:$0]  %s159_s1, 128, %s161_s21, [#allocation7]  }
 0x110   :  { %265 = dma.done.wait [#allocation7], 128  }
 0x111   :  { %266 = vsyncadd [#allocation7], 4294967168 }
 0x112   :  { %168 = vsyncpa [#allocation6], 1 }
 0x113   :  { %169 = vsyncpa [#allocation9], 1 }
 0x114   :  { %170 = vsyncpa [#allocation7], 1 }

</bundles_post_ra>
